<compile_context>
chip_gen: v6e
topology: v6e:2x2x1
jax: 0.10.0
libtpu: 0.0.40
codegen_flags: <defaults>
</compile_context>

<pallas_src>
import math
import functools

import jax
import jax.numpy as jnp
from jax import lax
from jax.experimental import pallas as pl
from jax.experimental.pallas import tpu as pltpu


_NEG_BIG = -1e30  # finite large-negative mask value (avoids -inf - -inf = NaN corners)


def _largest_divisor_leq(n, cap):
    """Largest divisor of n that is <= cap (chunk size for the blocked cumsum)."""
    if n <= cap:
        return n
    for t in range(cap, 0, -1):
        if n % t == 0:
            return t
    return n


def _select_top_queries(queries, k_t, *, key, factor):
    """Random-sample sparsity measure M and top-u query selection (JAX glue).

    queries: [B, L_Q, H, E] (native layout), k_t: [B, H, L_K, E].
    Returns (M_top [B,H,u] int32, u, U_part).
    """
    B, L_Q, H, E = queries.shape
    L_K = k_t.shape[2]
    U_part = min(factor * int(math.ceil(math.log(L_K))), L_K)
    u = min(factor * int(math.ceil(math.log(L_Q))), L_Q)

    index_sample = jax.random.randint(key, (L_Q, U_part), 0, L_K)

    if L_K <= U_part * E:
        # Contract first, gather sampled columns after: the (B,H,L_Q,L_K) slab is smaller
        # than the (B,H,L_Q,U_part,E) gathered-K intermediate in this regime.
        qk = jnp.einsum('blhe,bhse->bhls', queries, k_t,
                        preferred_element_type=jnp.float32)
        q_k_sample = jnp.take_along_axis(
            qk, index_sample[None, None].astype(jnp.int32), axis=-1)
    else:
        # TODO(synk): fuse this sampled-QK step into a Pallas kernel with index_sample
        # scalar-prefetched to avoid the [B,H,L_Q,U_part,E] HBM intermediate entirely.
        k_sample = jnp.take(k_t, index_sample.reshape(-1), axis=2)
        k_sample = k_sample.reshape(B, H, L_Q, U_part, E)
        q_k_sample = jnp.einsum('blhe,bhlse->bhls', queries, k_sample,
                                preferred_element_type=jnp.float32)

    M = jnp.max(q_k_sample, axis=-1) - jnp.sum(q_k_sample, axis=-1) / L_K
    M_top = lax.top_k(M, u)[1].astype(jnp.int32)                    # [B, H, u]
    return M_top, u, U_part


def _prob_attention_kernel(idx_sm_ref, *refs, scale, mask_flag, compute_attn,
                           n_top, chunk):
    """Dense per-(batch, head) hot path.

    idx_sm_ref : (B*H*u,) int32 scalar-prefetch (SMEM) -- selected query positions.
    refs (order driven by static flags):
      [idx_col]   (u, 1)   int32  VMEM   -- mask thresholds, only when mask_flag
      q           (u, E)          VMEM   -- top-u queries
      k           (L_K, E)        VMEM
      v           (L_V, D)        VMEM
      [tri]       (T, T)          VMEM   -- lower-triangular ones, only when mask_flag
      ctx         (L_Q, D)        VMEM out
      [attn_rows] (u, L_K)        VMEM out -- only when compute_attn
    """
    refs = list(refs)
    idx_col_ref = refs.pop(0) if mask_flag else None
    q_ref = refs.pop(0)
    k_ref = refs.pop(0)
    v_ref = refs.pop(0)
    tri_ref = refs.pop(0) if mask_flag else None
    ctx_ref = refs.pop(0)
    attn_rows_ref = refs.pop(0) if compute_attn else None

    q = q_ref[...]                       # (u, E)
    k = k_ref[...]                       # (L_K, E)
    L_V, D = v_ref.shape
    L_Q = ctx_ref.shape[0]

    # ---- sparse scores for the top-u queries.
    # Scale folded into Q (u*E mults, not u*L_K); MXU fed in the input dtype with f32
    # accumulation; dot_general contracts (1,1) so the (L_K,E) tile needs no transpose.
    qs = q * jnp.asarray(scale, dtype=q.dtype)
    scores = lax.dot_general(qs, k, (((1,), (1,)), ((), ())),
                             preferred_element_type=jnp.float32)    # (u, L_K) f32

    if mask_flag:
        # ProbMask: for a selected query at original position p, mask keys j > p.
        col = lax.broadcasted_iota(jnp.int32, scores.shape, 1)
        scores = jnp.where(col > idx_col_ref[...], _NEG_BIG, scores)

    # ---- numerically stable softmax over keys (divide via the EUP fast reciprocal;
    # ~1e-3 relative error, within the module's tolerance).
    m = jnp.max(scores, axis=-1, keepdims=True)
    e = jnp.exp(scores - m)
    denom = jnp.sum(e, axis=-1, keepdims=True)
    attn = e * pl.reciprocal(denom, approx=True)                    # (u, L_K) f32

    # ---- context rows for the selected queries (input-dtype MXU, f32 accumulate).
    upd = jnp.dot(attn.astype(v_ref.dtype), v_ref[...],
                  preferred_element_type=jnp.float32)               # (u, D) f32

    # ---- initial context written straight into the output block.
    if mask_flag:
        # cumsum(V) as a blocked prefix sum: per-chunk lower-triangular MXU matmul plus a
        # running f32 carry.  The (T,T) tri operand is a constant-index input (resident).
        tri = tri_ref[...]
        n_chunks = L_V // chunk

        def chunk_body(c, carry):
            off = pl.multiple_of(c * chunk, chunk)
            vblk = v_ref[pl.ds(off, chunk), :]                      # (T, D)
            part = jnp.dot(tri, vblk, preferred_element_type=jnp.float32) + carry
            ctx_ref[pl.ds(off, chunk), :] = part.astype(ctx_ref.dtype)
            return part[chunk - 1:chunk, :]                         # new carry (1, D)

        lax.fori_loop(0, n_chunks, chunk_body, jnp.zeros((1, D), jnp.float32))
    else:
        vmean = jnp.mean(v_ref[...].astype(jnp.float32), axis=0, keepdims=True)
        ctx_ref[...] = jnp.broadcast_to(vmean, (L_Q, D)).astype(ctx_ref.dtype)

    # ---- scatter the u updated rows with dynamic row stores (no one-hot matmuls,
    # no (L_Q, u) / (L_Q, L_K) intermediates).
    bh = pl.program_id(0) * pl.num_programs(1) + pl.program_id(1)
    for i in range(n_top):
        r = idx_sm_ref[bh * n_top + i]
        ctx_ref[pl.ds(r, 1), :] = upd[i:i + 1, :].astype(ctx_ref.dtype)

    if compute_attn:
        # Only the selected rows leave the kernel; the full map is assembled in glue.
        attn_rows_ref[...] = attn.astype(attn_rows_ref.dtype)


def prob_attention(queries, keys, values, *, key, mask_flag=True, factor=5,
                   scale=None, output_attention=False,
                   attn_dtype=jnp.bfloat16, cumsum_chunk=512):
    """ProbAttention forward.

    queries: [B, L_Q, H, E], keys: [B, L_K, H, E], values: [B, L_K, H, D].
    Returns (context [B, L_Q, H, D], attn [B, H, L_Q, L_K] (attn_dtype) or None).
    """
    B, L_Q, H, E = queries.shape
    _, L_K, _, D = values.shape
    L_V = L_K
    scale = scale if scale is not None else 1.0 / math.sqrt(E)
    if mask_flag:
        assert L_Q == L_V, "causal ProbAttention requires L_Q == L_V"

    # One explicit relayout of K/V to [B, H, L, *]: K_t is reused by the selection einsum,
    # and the (8,128) BlockSpec rule disallows a (1, L, 1, E) block on the native layout.
    k_t = jnp.transpose(keys, (0, 2, 1, 3))                          # [B, H, L_K, E]
    v_t = jnp.transpose(values, (0, 2, 1, 3))                        # [B, H, L_V, D]

    # --- selection phase (data-dependent sampling / top-k): JAX glue ---
    M_top, u, _ = _select_top_queries(queries, k_t, key=key, factor=factor)

    # Gather the top-u queries from the native layout (tiny result, no full Q transpose).
    q_red = jnp.take_along_axis(
        queries, jnp.transpose(M_top, (0, 2, 1))[..., None], axis=1)  # [B, u, H, E]
    q_red = jnp.transpose(q_red, (0, 2, 1, 3))                        # [B, H, u, E]

    idx_flat = M_top.reshape(-1).astype(jnp.int32)                    # (B*H*u,) -> SMEM
    idx_col = M_top[..., None].astype(jnp.int32)                      # (B, H, u, 1) -> VMEM

    chunk = _largest_divisor_leq(L_V, cumsum_chunk)
    if mask_flag:
        r = jnp.arange(chunk)
        tri = (r[:, None] >= r[None, :]).astype(values.dtype)         # (T, T) incl. diagonal

    # --- VMEM budget (double-buffered blocks + f32 intermediates), with headroom ---
    in_item = jnp.dtype(queries.dtype).itemsize
    attn_item = jnp.dtype(attn_dtype).itemsize
    est = 2 * (L_K * E + L_V * D + u * E + L_Q * D) * in_item + 2 * u * 4
    if mask_flag:
        est += 2 * chunk * chunk * in_item
    if output_attention:
        est += 2 * u * L_K * attn_item
    est += (4 * u * L_K + u * D + chunk * D + 2 * L_Q * D) * 4
    vmem_limit = int(min(max(2 * est, 32 * 1024 * 1024), 128 * 1024 * 1024))

    # --- Pallas call: grid over (batch, head), both parallel ---
    inputs = []
    in_specs = []
    if mask_flag:
        inputs.append(idx_col)
        in_specs.append(pl.BlockSpec((None, None, u, 1), lambda b, h, idx: (b, h, 0, 0)))
    inputs += [q_red, k_t, v_t]
    in_specs += [
        pl.BlockSpec((None, None, u, E), lambda b, h, idx: (b, h, 0, 0)),
        pl.BlockSpec((None, None, L_K, E), lambda b, h, idx: (b, h, 0, 0)),
        pl.BlockSpec((None, None, L_V, D), lambda b, h, idx: (b, h, 0, 0)),
    ]
    if mask_flag:
        inputs.append(tri)
        # Constant block index -> DMA'd once, stays VMEM-resident across the grid.
        in_specs.append(pl.BlockSpec((chunk, chunk), lambda b, h, idx: (0, 0)))

    out_shape = [jax.ShapeDtypeStruct((B, H, L_Q, D), queries.dtype)]
    out_specs = [pl.BlockSpec((None, None, L_Q, D), lambda b, h, idx: (b, h, 0, 0))]
    if output_attention:
        out_shape.append(jax.ShapeDtypeStruct((B, H, u, L_K), attn_dtype))
        out_specs.append(pl.BlockSpec((None, None, u, L_K), lambda b, h, idx: (b, h, 0, 0)))

    kernel = functools.partial(
        _prob_attention_kernel,
        scale=scale, mask_flag=mask_flag, compute_attn=output_attention,
        n_top=u, chunk=chunk)

    outs = pl.pallas_call(
        kernel,
        out_shape=tuple(out_shape),
        grid_spec=pltpu.PrefetchScalarGridSpec(
            num_scalar_prefetch=1,
            grid=(B, H),
            in_specs=tuple(in_specs),
            out_specs=tuple(out_specs),
        ),
        compiler_params=pltpu.CompilerParams(
            dimension_semantics=("parallel", "parallel"),
            vmem_limit_bytes=vmem_limit),
    )(idx_flat, *inputs)

    context = jnp.transpose(outs[0], (0, 2, 1, 3))                    # [B, L_Q, H, D]
    if not output_attention:
        # TODO(synk): nn.Dropout(attention_dropout) exists on the module but is never
        # applied in this forward; intentionally omitted.
        return context, None

    # Assemble the full attention map in glue on a prefilled bf16 array (one XLA pass),
    # instead of a per-head (L_Q, L_K) VMEM output block / one-hot matmul in the kernel.
    attn_rows = outs[1]                                               # (B, H, u, L_K)
    attns = jnp.full((B, H, L_Q, L_K), 1.0 / L_V, dtype=attn_dtype)
    bidx = jnp.arange(B)[:, None, None]
    hidx = jnp.arange(H)[None, :, None]
    attns = attns.at[bidx, hidx, M_top, :].set(attn_rows)
    return context, attns


def _reference(queries, keys, values, *, key, mask_flag=True, factor=5,
               scale=None, output_attention=False):
    """Pure-JAX reproduction of the PyTorch ProbAttention dense path.

    The selection phase (JAX glue, not part of the kernel under test) is shared with the
    Pallas path so both operate on identical top-u indices.
    """
    B, L_Q, H, E = queries.shape
    _, L_K, _, D = values.shape
    L_V = L_K
    scale = scale if scale is not None else 1.0 / math.sqrt(E)

    q = jnp.transpose(queries, (0, 2, 1, 3))
    k = jnp.transpose(keys, (0, 2, 1, 3))
    v = jnp.transpose(values, (0, 2, 1, 3))

    M_top, u, _ = _select_top_queries(queries, k, key=key, factor=factor)
    Q_reduce = jnp.take_along_axis(q, M_top[..., None], axis=2)

    scores = jnp.einsum('bhue,bhke->bhuk', Q_reduce, k) * scale
    if mask_flag:
        col = jnp.arange(L_K)[None, None, None, :]
        scores = jnp.where(col > M_top[..., None], -jnp.inf, scores)
    attn = jax.nn.softmax(scores, axis=-1)
    upd = jnp.einsum('bhuk,bhkd->bhud', attn, v)

    if mask_flag:
        ctx = jnp.cumsum(v, axis=2)
    else:
        ctx = jnp.broadcast_to(jnp.mean(v, axis=2, keepdims=True), (B, H, L_Q, D))

    bidx = jnp.arange(B)[:, None, None]
    hidx = jnp.arange(H)[None, :, None]
    ctx = ctx.at[bidx, hidx, M_top, :].set(upd)
    context = jnp.transpose(ctx, (0, 2, 1, 3))

    if output_attention:
        attns = jnp.full((B, H, L_V, L_V), 1.0 / L_V, dtype=attn.dtype)
        attns = attns.at[bidx, hidx, M_top, :].set(attn)
        return context, attns
    return context, None


if __name__ == "__main__":
    B, L, H, E, D = 2, 32, 4, 32, 32
    factor = 5

    root = jax.random.PRNGKey(0)
    kq, kk, kv, ksample = jax.random.split(root, 4)
    queries = jax.random.normal(kq, (B, L, H, E), dtype=jnp.float32)
    keys_ = jax.random.normal(kk, (B, L, H, E), dtype=jnp.float32)
    values = jax.random.normal(kv, (B, L, H, D), dtype=jnp.float32)

    # causal ProbAttention with attention output
    ctx, attn = prob_attention(queries, keys_, values, key=ksample,
                               mask_flag=True, factor=factor, output_attention=True)
    ctx = jax.block_until_ready(ctx)
    attn = jax.block_until_ready(attn)
    ctx_ref, attn_ref = _reference(queries, keys_, values, key=ksample,
                                   mask_flag=True, factor=factor, output_attention=True)
    assert ctx.shape == (B, L, H, D)
    assert attn.shape == (B, H, L, L)
    assert jnp.allclose(ctx, ctx_ref, atol=1e-2, rtol=1e-2), "context mismatch (causal)"
    assert jnp.allclose(attn.astype(jnp.float32), attn_ref,
                        atol=1e-2, rtol=1e-2), "attn mismatch (causal)"

    # non-causal, no attention output (exercises the mean-context / no-mask variant)
    ctx2, attn2 = prob_attention(queries, keys_, values, key=ksample,
                                 mask_flag=False, factor=factor, output_attention=False)
    ctx2 = jax.block_until_ready(ctx2)
    ctx2_ref, _ = _reference(queries, keys_, values, key=ksample,
                             mask_flag=False, factor=factor, output_attention=False)
    assert attn2 is None
    assert jnp.allclose(ctx2, ctx2_ref, atol=1e-2, rtol=1e-2), "context mismatch (non-causal)"

    print("KERNEL_OK")
</pallas_src>

<mosaic_0001>
module attributes {stable_mosaic.version = 11 : i64} {
  func.func @_prob_attention_kernel(%arg0: i32, %arg1: i32, %arg2: memref<160xi32, #tpu.memory_space<smem>>, %arg3: memref<1x1x20x1xi32, #tpu.memory_space<vmem>>, %arg4: memref<1x1x20x32xf32, #tpu.memory_space<vmem>>, %arg5: memref<1x1x32x32xf32, #tpu.memory_space<vmem>>, %arg6: memref<1x1x32x32xf32, #tpu.memory_space<vmem>>, %arg7: memref<32x32xf32, #tpu.memory_space<vmem>>, %arg8: memref<1x1x32x32xf32, #tpu.memory_space<vmem>>, %arg9: memref<1x1x20x32xbf16, #tpu.memory_space<vmem>>) attributes {dimension_semantics = [#tpu.dimension_semantics<parallel>, #tpu.dimension_semantics<parallel>], iteration_bounds = array<i64: 2, 4>, scalar_prefetch = 1 : i64, scratch_operands = 0 : i64, tpu.core_type = #tpu.core_type<tc>, window_params = [{transform_indices = @transform_0, window_bounds = array<i64: 1, 1, 20, 1>}, {transform_indices = @transform_1, window_bounds = array<i64: 1, 1, 20, 32>}, {transform_indices = @transform_2, window_bounds = array<i64: 1, 1, 32, 32>}, {transform_indices = @transform_3, window_bounds = array<i64: 1, 1, 32, 32>}, {pipeline_mode = #tpu.pipeline_mode<synchronous>, transform_indices = @transform_4, window_bounds = array<i64: 32, 32>}, {transform_indices = @transform_5, window_bounds = array<i64: 1, 1, 32, 32>}, {transform_indices = @transform_6, window_bounds = array<i64: 1, 1, 20, 32>}]} {
    %c0 = arith.constant 0 : index
    %c0_0 = arith.constant 0 : index
    %c0_1 = arith.constant 0 : index
    %c0_2 = arith.constant 0 : index
    %0 = vector.load %arg4[%c0, %c0_0, %c0_1, %c0_2] : memref<1x1x20x32xf32, #tpu.memory_space<vmem>>, vector<1x1x20x32xf32>
    %1 = vector.shape_cast %0 : vector<1x1x20x32xf32> to vector<20x32xf32>
    %c0_3 = arith.constant 0 : index
    %c0_4 = arith.constant 0 : index
    %c0_5 = arith.constant 0 : index
    %c0_6 = arith.constant 0 : index
    %2 = vector.load %arg5[%c0_3, %c0_4, %c0_5, %c0_6] : memref<1x1x32x32xf32, #tpu.memory_space<vmem>>, vector<1x1x32x32xf32>
    %3 = vector.shape_cast %2 : vector<1x1x32x32xf32> to vector<32x32xf32>
    %cst = arith.constant 0.176776692 : f32
    %4 = vector.broadcast %cst : f32 to vector<20x32xf32>
    %5 = arith.mulf %1, %4 : vector<20x32xf32>
    %cst_7 = arith.constant dense<0.000000e+00> : vector<20x32xf32>
    %6 = tpu.matmul %5, %3, %cst_7 {dimension_numbers = #tpu.dot_dimension_numbers<[1], [1], [0], [0], [0, 0, 1, 0], [], []>} : vector<20x32xf32>, vector<32x32xf32>, vector<20x32xf32> -> vector<20x32xf32>
    %7 = tpu.iota {dimensions = array<i32: 1>} : vector<20x32xi32>
    %c0_8 = arith.constant 0 : index
    %c0_9 = arith.constant 0 : index
    %c0_10 = arith.constant 0 : index
    %c0_11 = arith.constant 0 : index
    %8 = vector.load %arg3[%c0_8, %c0_9, %c0_10, %c0_11] : memref<1x1x20x1xi32, #tpu.memory_space<vmem>>, vector<1x1x20x1xi32>
    %9 = vector.shape_cast %8 : vector<1x1x20x1xi32> to vector<20x1xi32>
    %10 = vector.broadcast %9 : vector<20x1xi32> to vector<20x32xi32>
    %11 = arith.cmpi sgt, %7, %10 : vector<20x32xi32>
    %cst_12 = arith.constant -1.000000e+30 : f32
    %12 = vector.broadcast %cst_12 : f32 to vector<20x32xf32>
    %13 = arith.select %11, %12, %6 : vector<20x32xi1>, vector<20x32xf32>
    %cst_13 = arith.constant dense<0xFF800000> : vector<20xf32>
    %14 = vector.multi_reduction <maximumf>, %13, %cst_13 [1] : vector<20x32xf32> to vector<20xf32>
    %15 = vector.shape_cast %14 : vector<20xf32> to vector<20x1xf32>
    %16 = vector.broadcast %15 : vector<20x1xf32> to vector<20x32xf32>
    %17 = arith.subf %13, %16 : vector<20x32xf32>
    %18 = math.exp %17 : vector<20x32xf32>
    %cst_14 = arith.constant dense<0.000000e+00> : vector<20xf32>
    %19 = vector.multi_reduction <add>, %18, %cst_14 [1] : vector<20x32xf32> to vector<20xf32>
    %20 = vector.shape_cast %19 : vector<20xf32> to vector<20x1xf32>
    %21 = tpu.reciprocal %20 {approx = true} : vector<20x1xf32> -> vector<20x1xf32>
    %22 = vector.broadcast %21 : vector<20x1xf32> to vector<20x32xf32>
    %23 = arith.mulf %18, %22 : vector<20x32xf32>
    %c0_15 = arith.constant 0 : index
    %c0_16 = arith.constant 0 : index
    %c0_17 = arith.constant 0 : index
    %c0_18 = arith.constant 0 : index
    %24 = vector.load %arg6[%c0_15, %c0_16, %c0_17, %c0_18] : memref<1x1x32x32xf32, #tpu.memory_space<vmem>>, vector<1x1x32x32xf32>
    %25 = vector.shape_cast %24 : vector<1x1x32x32xf32> to vector<32x32xf32>
    %cst_19 = arith.constant dense<0.000000e+00> : vector<20x32xf32>
    %26 = tpu.matmul %23, %25, %cst_19 {dimension_numbers = #tpu.dot_dimension_numbers<[1], [0], [0], [1], [0, 0, 1, 1], [], []>} : vector<20x32xf32>, vector<32x32xf32>, vector<20x32xf32> -> vector<20x32xf32>
    %c0_20 = arith.constant 0 : index
    %c0_21 = arith.constant 0 : index
    %27 = vector.load %arg7[%c0_20, %c0_21] : memref<32x32xf32, #tpu.memory_space<vmem>>, vector<32x32xf32>
    %cst_22 = arith.constant 0.000000e+00 : f32
    %28 = vector.broadcast %cst_22 : f32 to vector<1x32xf32>
    %c0_i32 = arith.constant 0 : i32
    %c32_i32 = arith.constant 32 : i32
    %29 = arith.muli %c0_i32, %c32_i32 : i32
    %30 = tpu.assume_multiple %29, 32 : i32
    %c0_23 = arith.constant 0 : index
    %c0_24 = arith.constant 0 : index
    %31 = arith.index_cast %30 : i32 to index
    %c0_25 = arith.constant 0 : index
    %32 = vector.load %arg6[%c0_23, %c0_24, %31, %c0_25] : memref<1x1x32x32xf32, #tpu.memory_space<vmem>>, vector<1x1x32x32xf32>
    %33 = vector.shape_cast %32 : vector<1x1x32x32xf32> to vector<32x32xf32>
    %cst_26 = arith.constant dense<0.000000e+00> : vector<32x32xf32>
    %34 = tpu.matmul %27, %33, %cst_26 {dimension_numbers = #tpu.dot_dimension_numbers<[1], [0], [0], [1], [0, 0, 1, 1], [], []>} : vector<32x32xf32>, vector<32x32xf32>, vector<32x32xf32> -> vector<32x32xf32>
    %35 = vector.broadcast %28 : vector<1x32xf32> to vector<32x32xf32>
    %36 = arith.addf %34, %35 : vector<32x32xf32>
    %c0_27 = arith.constant 0 : index
    %c0_28 = arith.constant 0 : index
    %37 = arith.index_cast %30 : i32 to index
    %c0_29 = arith.constant 0 : index
    %38 = vector.load %arg8[%c0_27, %c0_28, %37, %c0_29] : memref<1x1x32x32xf32, #tpu.memory_space<vmem>>, vector<1x1x32x32xf32>
    %39 = vector.shape_cast %38 : vector<1x1x32x32xf32> to vector<32x32xf32>
    %40 = vector.shape_cast %36 : vector<32x32xf32> to vector<1x1x32x32xf32>
    tpu.vector_store %arg8[%c0_27, %c0_28, %37, %c0_29], %40 {strides = array<i32>} : memref<1x1x32x32xf32, #tpu.memory_space<vmem>>, vector<1x1x32x32xf32>,
    %41 = vector.extract_strided_slice %36 {offsets = [31, 0], sizes = [1, 32], strides = [1, 1]} : vector<32x32xf32> to vector<1x32xf32>
    %c1_i32 = arith.constant 1 : i32
    %c4_i32 = arith.constant 4 : i32
    %42 = arith.muli %arg0, %c4_i32 : i32
    %43 = arith.addi %42, %arg1 : i32
    %c20_i32 = arith.constant 20 : i32
    %44 = arith.muli %43, %c20_i32 : i32
    %c0_i32_30 = arith.constant 0 : i32
    %45 = arith.addi %44, %c0_i32_30 : i32
    %46 = arith.index_cast %45 : i32 to index
    %47 = memref.load %arg2[%46] : memref<160xi32, #tpu.memory_space<smem>>
    %48 = vector.extract_strided_slice %26 {offsets = [0, 0], sizes = [1, 32], strides = [1, 1]} : vector<20x32xf32> to vector<1x32xf32>
    %c0_31 = arith.constant 0 : index
    %c0_32 = arith.constant 0 : index
    %49 = arith.index_cast %47 : i32 to index
    %c0_33 = arith.constant 0 : index
    %50 = vector.load %arg8[%c0_31, %c0_32, %49, %c0_33] : memref<1x1x32x32xf32, #tpu.memory_space<vmem>>, vector<1x1x1x32xf32>
    %51 = vector.shape_cast %50 : vector<1x1x1x32xf32> to vector<1x32xf32>
    %52 = vector.shape_cast %48 : vector<1x32xf32> to vector<1x1x1x32xf32>
    tpu.vector_store %arg8[%c0_31, %c0_32, %49, %c0_33], %52 {strides = array<i32>} : memref<1x1x32x32xf32, #tpu.memory_space<vmem>>, vector<1x1x1x32xf32>,
    %c20_i32_34 = arith.constant 20 : i32
    %53 = arith.muli %43, %c20_i32_34 : i32
    %c1_i32_35 = arith.constant 1 : i32
    %54 = arith.addi %53, %c1_i32_35 : i32
    %55 = arith.index_cast %54 : i32 to index
    %56 = memref.load %arg2[%55] : memref<160xi32, #tpu.memory_space<smem>>
    %57 = vector.extract_strided_slice %26 {offsets = [1, 0], sizes = [1, 32], strides = [1, 1]} : vector<20x32xf32> to vector<1x32xf32>
    %c0_36 = arith.constant 0 : index
    %c0_37 = arith.constant 0 : index
    %58 = arith.index_cast %56 : i32 to index
    %c0_38 = arith.constant 0 : index
    %59 = vector.load %arg8[%c0_36, %c0_37, %58, %c0_38] : memref<1x1x32x32xf32, #tpu.memory_space<vmem>>, vector<1x1x1x32xf32>
    %60 = vector.shape_cast %59 : vector<1x1x1x32xf32> to vector<1x32xf32>
    %61 = vector.shape_cast %57 : vector<1x32xf32> to vector<1x1x1x32xf32>
    tpu.vector_store %arg8[%c0_36, %c0_37, %58, %c0_38], %61 {strides = array<i32>} : memref<1x1x32x32xf32, #tpu.memory_space<vmem>>, vector<1x1x1x32xf32>,
    %c20_i32_39 = arith.constant 20 : i32
    %62 = arith.muli %43, %c20_i32_39 : i32
    %c2_i32 = arith.constant 2 : i32
    %63 = arith.addi %62, %c2_i32 : i32
    %64 = arith.index_cast %63 : i32 to index
    %65 = memref.load %arg2[%64] : memref<160xi32, #tpu.memory_space<smem>>
    %66 = vector.extract_strided_slice %26 {offsets = [2, 0], sizes = [1, 32], strides = [1, 1]} : vector<20x32xf32> to vector<1x32xf32>
    %c0_40 = arith.constant 0 : index
    %c0_41 = arith.constant 0 : index
    %67 = arith.index_cast %65 : i32 to index
    %c0_42 = arith.constant 0 : index
    %68 = vector.load %arg8[%c0_40, %c0_41, %67, %c0_42] : memref<1x1x32x32xf32, #tpu.memory_space<vmem>>, vector<1x1x1x32xf32>
    %69 = vector.shape_cast %68 : vector<1x1x1x32xf32> to vector<1x32xf32>
    %70 = vector.shape_cast %66 : vector<1x32xf32> to vector<1x1x1x32xf32>
    tpu.vector_store %arg8[%c0_40, %c0_41, %67, %c0_42], %70 {strides = array<i32>} : memref<1x1x32x32xf32, #tpu.memory_space<vmem>>, vector<1x1x1x32xf32>,
    %c20_i32_43 = arith.constant 20 : i32
    %71 = arith.muli %43, %c20_i32_43 : i32
    %c3_i32 = arith.constant 3 : i32
    %72 = arith.addi %71, %c3_i32 : i32
    %73 = arith.index_cast %72 : i32 to index
    %74 = memref.load %arg2[%73] : memref<160xi32, #tpu.memory_space<smem>>
    %75 = vector.extract_strided_slice %26 {offsets = [3, 0], sizes = [1, 32], strides = [1, 1]} : vector<20x32xf32> to vector<1x32xf32>
    %c0_44 = arith.constant 0 : index
    %c0_45 = arith.constant 0 : index
    %76 = arith.index_cast %74 : i32 to index
    %c0_46 = arith.constant 0 : index
    %77 = vector.load %arg8[%c0_44, %c0_45, %76, %c0_46] : memref<1x1x32x32xf32, #tpu.memory_space<vmem>>, vector<1x1x1x32xf32>
    %78 = vector.shape_cast %77 : vector<1x1x1x32xf32> to vector<1x32xf32>
    %79 = vector.shape_cast %75 : vector<1x32xf32> to vector<1x1x1x32xf32>
    tpu.vector_store %arg8[%c0_44, %c0_45, %76, %c0_46], %79 {strides = array<i32>} : memref<1x1x32x32xf32, #tpu.memory_space<vmem>>, vector<1x1x1x32xf32>,
    %c20_i32_47 = arith.constant 20 : i32
    %80 = arith.muli %43, %c20_i32_47 : i32
    %c4_i32_48 = arith.constant 4 : i32
    %81 = arith.addi %80, %c4_i32_48 : i32
    %82 = arith.index_cast %81 : i32 to index
    %83 = memref.load %arg2[%82] : memref<160xi32, #tpu.memory_space<smem>>
    %84 = vector.extract_strided_slice %26 {offsets = [4, 0], sizes = [1, 32], strides = [1, 1]} : vector<20x32xf32> to vector<1x32xf32>
    %c0_49 = arith.constant 0 : index
    %c0_50 = arith.constant 0 : index
    %85 = arith.index_cast %83 : i32 to index
    %c0_51 = arith.constant 0 : index
    %86 = vector.load %arg8[%c0_49, %c0_50, %85, %c0_51] : memref<1x1x32x32xf32, #tpu.memory_space<vmem>>, vector<1x1x1x32xf32>
    %87 = vector.shape_cast %86 : vector<1x1x1x32xf32> to vector<1x32xf32>
    %88 = vector.shape_cast %84 : vector<1x32xf32> to vector<1x1x1x32xf32>
    tpu.vector_store %arg8[%c0_49, %c0_50, %85, %c0_51], %88 {strides = array<i32>} : memref<1x1x32x32xf32, #tpu.memory_space<vmem>>, vector<1x1x1x32xf32>,
    %c20_i32_52 = arith.constant 20 : i32
    %89 = arith.muli %43, %c20_i32_52 : i32
    %c5_i32 = arith.constant 5 : i32
    %90 = arith.addi %89, %c5_i32 : i32
    %91 = arith.index_cast %90 : i32 to index
    %92 = memref.load %arg2[%91] : memref<160xi32, #tpu.memory_space<smem>>
    %93 = vector.extract_strided_slice %26 {offsets = [5, 0], sizes = [1, 32], strides = [1, 1]} : vector<20x32xf32> to vector<1x32xf32>
    %c0_53 = arith.constant 0 : index
    %c0_54 = arith.constant 0 : index
    %94 = arith.index_cast %92 : i32 to index
    %c0_55 = arith.constant 0 : index
    %95 = vector.load %arg8[%c0_53, %c0_54, %94, %c0_55] : memref<1x1x32x32xf32, #tpu.memory_space<vmem>>, vector<1x1x1x32xf32>
    %96 = vector.shape_cast %95 : vector<1x1x1x32xf32> to vector<1x32xf32>
    %97 = vector.shape_cast %93 : vector<1x32xf32> to vector<1x1x1x32xf32>
    tpu.vector_store %arg8[%c0_53, %c0_54, %94, %c0_55], %97 {strides = array<i32>} : memref<1x1x32x32xf32, #tpu.memory_space<vmem>>, vector<1x1x1x32xf32>,
    %c20_i32_56 = arith.constant 20 : i32
    %98 = arith.muli %43, %c20_i32_56 : i32
    %c6_i32 = arith.constant 6 : i32
    %99 = arith.addi %98, %c6_i32 : i32
    %100 = arith.index_cast %99 : i32 to index
    %101 = memref.load %arg2[%100] : memref<160xi32, #tpu.memory_space<smem>>
    %102 = vector.extract_strided_slice %26 {offsets = [6, 0], sizes = [1, 32], strides = [1, 1]} : vector<20x32xf32> to vector<1x32xf32>
    %c0_57 = arith.constant 0 : index
    %c0_58 = arith.constant 0 : index
    %103 = arith.index_cast %101 : i32 to index
    %c0_59 = arith.constant 0 : index
    %104 = vector.load %arg8[%c0_57, %c0_58, %103, %c0_59] : memref<1x1x32x32xf32, #tpu.memory_space<vmem>>, vector<1x1x1x32xf32>
    %105 = vector.shape_cast %104 : vector<1x1x1x32xf32> to vector<1x32xf32>
    %106 = vector.shape_cast %102 : vector<1x32xf32> to vector<1x1x1x32xf32>
    tpu.vector_store %arg8[%c0_57, %c0_58, %103, %c0_59], %106 {strides = array<i32>} : memref<1x1x32x32xf32, #tpu.memory_space<vmem>>, vector<1x1x1x32xf32>,
    %c20_i32_60 = arith.constant 20 : i32
    %107 = arith.muli %43, %c20_i32_60 : i32
    %c7_i32 = arith.constant 7 : i32
    %108 = arith.addi %107, %c7_i32 : i32
    %109 = arith.index_cast %108 : i32 to index
    %110 = memref.load %arg2[%109] : memref<160xi32, #tpu.memory_space<smem>>
    %111 = vector.extract_strided_slice %26 {offsets = [7, 0], sizes = [1, 32], strides = [1, 1]} : vector<20x32xf32> to vector<1x32xf32>
    %c0_61 = arith.constant 0 : index
    %c0_62 = arith.constant 0 : index
    %112 = arith.index_cast %110 : i32 to index
    %c0_63 = arith.constant 0 : index
    %113 = vector.load %arg8[%c0_61, %c0_62, %112, %c0_63] : memref<1x1x32x32xf32, #tpu.memory_space<vmem>>, vector<1x1x1x32xf32>
    %114 = vector.shape_cast %113 : vector<1x1x1x32xf32> to vector<1x32xf32>
    %115 = vector.shape_cast %111 : vector<1x32xf32> to vector<1x1x1x32xf32>
    tpu.vector_store %arg8[%c0_61, %c0_62, %112, %c0_63], %115 {strides = array<i32>} : memref<1x1x32x32xf32, #tpu.memory_space<vmem>>, vector<1x1x1x32xf32>,
    %c20_i32_64 = arith.constant 20 : i32
    %116 = arith.muli %43, %c20_i32_64 : i32
    %c8_i32 = arith.constant 8 : i32
    %117 = arith.addi %116, %c8_i32 : i32
    %118 = arith.index_cast %117 : i32 to index
    %119 = memref.load %arg2[%118] : memref<160xi32, #tpu.memory_space<smem>>
    %120 = vector.extract_strided_slice %26 {offsets = [8, 0], sizes = [1, 32], strides = [1, 1]} : vector<20x32xf32> to vector<1x32xf32>
    %c0_65 = arith.constant 0 : index
    %c0_66 = arith.constant 0 : index
    %121 = arith.index_cast %119 : i32 to index
    %c0_67 = arith.constant 0 : index
    %122 = vector.load %arg8[%c0_65, %c0_66, %121, %c0_67] : memref<1x1x32x32xf32, #tpu.memory_space<vmem>>, vector<1x1x1x32xf32>
    %123 = vector.shape_cast %122 : vector<1x1x1x32xf32> to vector<1x32xf32>
    %124 = vector.shape_cast %120 : vector<1x32xf32> to vector<1x1x1x32xf32>
    tpu.vector_store %arg8[%c0_65, %c0_66, %121, %c0_67], %124 {strides = array<i32>} : memref<1x1x32x32xf32, #tpu.memory_space<vmem>>, vector<1x1x1x32xf32>,
    %c20_i32_68 = arith.constant 20 : i32
    %125 = arith.muli %43, %c20_i32_68 : i32
    %c9_i32 = arith.constant 9 : i32
    %126 = arith.addi %125, %c9_i32 : i32
    %127 = arith.index_cast %126 : i32 to index
    %128 = memref.load %arg2[%127] : memref<160xi32, #tpu.memory_space<smem>>
    %129 = vector.extract_strided_slice %26 {offsets = [9, 0], sizes = [1, 32], strides = [1, 1]} : vector<20x32xf32> to vector<1x32xf32>
    %c0_69 = arith.constant 0 : index
    %c0_70 = arith.constant 0 : index
    %130 = arith.index_cast %128 : i32 to index
    %c0_71 = arith.constant 0 : index
    %131 = vector.load %arg8[%c0_69, %c0_70, %130, %c0_71] : memref<1x1x32x32xf32, #tpu.memory_space<vmem>>, vector<1x1x1x32xf32>
    %132 = vector.shape_cast %131 : vector<1x1x1x32xf32> to vector<1x32xf32>
    %133 = vector.shape_cast %129 : vector<1x32xf32> to vector<1x1x1x32xf32>
    tpu.vector_store %arg8[%c0_69, %c0_70, %130, %c0_71], %133 {strides = array<i32>} : memref<1x1x32x32xf32, #tpu.memory_space<vmem>>, vector<1x1x1x32xf32>,
    %c20_i32_72 = arith.constant 20 : i32
    %134 = arith.muli %43, %c20_i32_72 : i32
    %c10_i32 = arith.constant 10 : i32
    %135 = arith.addi %134, %c10_i32 : i32
    %136 = arith.index_cast %135 : i32 to index
    %137 = memref.load %arg2[%136] : memref<160xi32, #tpu.memory_space<smem>>
    %138 = vector.extract_strided_slice %26 {offsets = [10, 0], sizes = [1, 32], strides = [1, 1]} : vector<20x32xf32> to vector<1x32xf32>
    %c0_73 = arith.constant 0 : index
    %c0_74 = arith.constant 0 : index
    %139 = arith.index_cast %137 : i32 to index
    %c0_75 = arith.constant 0 : index
    %140 = vector.load %arg8[%c0_73, %c0_74, %139, %c0_75] : memref<1x1x32x32xf32, #tpu.memory_space<vmem>>, vector<1x1x1x32xf32>
    %141 = vector.shape_cast %140 : vector<1x1x1x32xf32> to vector<1x32xf32>
    %142 = vector.shape_cast %138 : vector<1x32xf32> to vector<1x1x1x32xf32>
    tpu.vector_store %arg8[%c0_73, %c0_74, %139, %c0_75], %142 {strides = array<i32>} : memref<1x1x32x32xf32, #tpu.memory_space<vmem>>, vector<1x1x1x32xf32>,
    %c20_i32_76 = arith.constant 20 : i32
    %143 = arith.muli %43, %c20_i32_76 : i32
    %c11_i32 = arith.constant 11 : i32
    %144 = arith.addi %143, %c11_i32 : i32
    %145 = arith.index_cast %144 : i32 to index
    %146 = memref.load %arg2[%145] : memref<160xi32, #tpu.memory_space<smem>>
    %147 = vector.extract_strided_slice %26 {offsets = [11, 0], sizes = [1, 32], strides = [1, 1]} : vector<20x32xf32> to vector<1x32xf32>
    %c0_77 = arith.constant 0 : index
    %c0_78 = arith.constant 0 : index
    %148 = arith.index_cast %146 : i32 to index
    %c0_79 = arith.constant 0 : index
    %149 = vector.load %arg8[%c0_77, %c0_78, %148, %c0_79] : memref<1x1x32x32xf32, #tpu.memory_space<vmem>>, vector<1x1x1x32xf32>
    %150 = vector.shape_cast %149 : vector<1x1x1x32xf32> to vector<1x32xf32>
    %151 = vector.shape_cast %147 : vector<1x32xf32> to vector<1x1x1x32xf32>
    tpu.vector_store %arg8[%c0_77, %c0_78, %148, %c0_79], %151 {strides = array<i32>} : memref<1x1x32x32xf32, #tpu.memory_space<vmem>>, vector<1x1x1x32xf32>,
    %c20_i32_80 = arith.constant 20 : i32
    %152 = arith.muli %43, %c20_i32_80 : i32
    %c12_i32 = arith.constant 12 : i32
    %153 = arith.addi %152, %c12_i32 : i32
    %154 = arith.index_cast %153 : i32 to index
    %155 = memref.load %arg2[%154] : memref<160xi32, #tpu.memory_space<smem>>
    %156 = vector.extract_strided_slice %26 {offsets = [12, 0], sizes = [1, 32], strides = [1, 1]} : vector<20x32xf32> to vector<1x32xf32>
    %c0_81 = arith.constant 0 : index
    %c0_82 = arith.constant 0 : index
    %157 = arith.index_cast %155 : i32 to index
    %c0_83 = arith.constant 0 : index
    %158 = vector.load %arg8[%c0_81, %c0_82, %157, %c0_83] : memref<1x1x32x32xf32, #tpu.memory_space<vmem>>, vector<1x1x1x32xf32>
    %159 = vector.shape_cast %158 : vector<1x1x1x32xf32> to vector<1x32xf32>
    %160 = vector.shape_cast %156 : vector<1x32xf32> to vector<1x1x1x32xf32>
    tpu.vector_store %arg8[%c0_81, %c0_82, %157, %c0_83], %160 {strides = array<i32>} : memref<1x1x32x32xf32, #tpu.memory_space<vmem>>, vector<1x1x1x32xf32>,
    %c20_i32_84 = arith.constant 20 : i32
    %161 = arith.muli %43, %c20_i32_84 : i32
    %c13_i32 = arith.constant 13 : i32
    %162 = arith.addi %161, %c13_i32 : i32
    %163 = arith.index_cast %162 : i32 to index
    %164 = memref.load %arg2[%163] : memref<160xi32, #tpu.memory_space<smem>>
    %165 = vector.extract_strided_slice %26 {offsets = [13, 0], sizes = [1, 32], strides = [1, 1]} : vector<20x32xf32> to vector<1x32xf32>
    %c0_85 = arith.constant 0 : index
    %c0_86 = arith.constant 0 : index
    %166 = arith.index_cast %164 : i32 to index
    %c0_87 = arith.constant 0 : index
    %167 = vector.load %arg8[%c0_85, %c0_86, %166, %c0_87] : memref<1x1x32x32xf32, #tpu.memory_space<vmem>>, vector<1x1x1x32xf32>
    %168 = vector.shape_cast %167 : vector<1x1x1x32xf32> to vector<1x32xf32>
    %169 = vector.shape_cast %165 : vector<1x32xf32> to vector<1x1x1x32xf32>
    tpu.vector_store %arg8[%c0_85, %c0_86, %166, %c0_87], %169 {strides = array<i32>} : memref<1x1x32x32xf32, #tpu.memory_space<vmem>>, vector<1x1x1x32xf32>,
    %c20_i32_88 = arith.constant 20 : i32
    %170 = arith.muli %43, %c20_i32_88 : i32
    %c14_i32 = arith.constant 14 : i32
    %171 = arith.addi %170, %c14_i32 : i32
    %172 = arith.index_cast %171 : i32 to index
    %173 = memref.load %arg2[%172] : memref<160xi32, #tpu.memory_space<smem>>
    %174 = vector.extract_strided_slice %26 {offsets = [14, 0], sizes = [1, 32], strides = [1, 1]} : vector<20x32xf32> to vector<1x32xf32>
    %c0_89 = arith.constant 0 : index
    %c0_90 = arith.constant 0 : index
    %175 = arith.index_cast %173 : i32 to index
    %c0_91 = arith.constant 0 : index
    %176 = vector.load %arg8[%c0_89, %c0_90, %175, %c0_91] : memref<1x1x32x32xf32, #tpu.memory_space<vmem>>, vector<1x1x1x32xf32>
    %177 = vector.shape_cast %176 : vector<1x1x1x32xf32> to vector<1x32xf32>
    %178 = vector.shape_cast %174 : vector<1x32xf32> to vector<1x1x1x32xf32>
    tpu.vector_store %arg8[%c0_89, %c0_90, %175, %c0_91], %178 {strides = array<i32>} : memref<1x1x32x32xf32, #tpu.memory_space<vmem>>, vector<1x1x1x32xf32>,
    %c20_i32_92 = arith.constant 20 : i32
    %179 = arith.muli %43, %c20_i32_92 : i32
    %c15_i32 = arith.constant 15 : i32
    %180 = arith.addi %179, %c15_i32 : i32
    %181 = arith.index_cast %180 : i32 to index
    %182 = memref.load %arg2[%181] : memref<160xi32, #tpu.memory_space<smem>>
    %183 = vector.extract_strided_slice %26 {offsets = [15, 0], sizes = [1, 32], strides = [1, 1]} : vector<20x32xf32> to vector<1x32xf32>
    %c0_93 = arith.constant 0 : index
    %c0_94 = arith.constant 0 : index
    %184 = arith.index_cast %182 : i32 to index
    %c0_95 = arith.constant 0 : index
    %185 = vector.load %arg8[%c0_93, %c0_94, %184, %c0_95] : memref<1x1x32x32xf32, #tpu.memory_space<vmem>>, vector<1x1x1x32xf32>
    %186 = vector.shape_cast %185 : vector<1x1x1x32xf32> to vector<1x32xf32>
    %187 = vector.shape_cast %183 : vector<1x32xf32> to vector<1x1x1x32xf32>
    tpu.vector_store %arg8[%c0_93, %c0_94, %184, %c0_95], %187 {strides = array<i32>} : memref<1x1x32x32xf32, #tpu.memory_space<vmem>>, vector<1x1x1x32xf32>,
    %c20_i32_96 = arith.constant 20 : i32
    %188 = arith.muli %43, %c20_i32_96 : i32
    %c16_i32 = arith.constant 16 : i32
    %189 = arith.addi %188, %c16_i32 : i32
    %190 = arith.index_cast %189 : i32 to index
    %191 = memref.load %arg2[%190] : memref<160xi32, #tpu.memory_space<smem>>
    %192 = vector.extract_strided_slice %26 {offsets = [16, 0], sizes = [1, 32], strides = [1, 1]} : vector<20x32xf32> to vector<1x32xf32>
    %c0_97 = arith.constant 0 : index
    %c0_98 = arith.constant 0 : index
    %193 = arith.index_cast %191 : i32 to index
    %c0_99 = arith.constant 0 : index
    %194 = vector.load %arg8[%c0_97, %c0_98, %193, %c0_99] : memref<1x1x32x32xf32, #tpu.memory_space<vmem>>, vector<1x1x1x32xf32>
    %195 = vector.shape_cast %194 : vector<1x1x1x32xf32> to vector<1x32xf32>
    %196 = vector.shape_cast %192 : vector<1x32xf32> to vector<1x1x1x32xf32>
    tpu.vector_store %arg8[%c0_97, %c0_98, %193, %c0_99], %196 {strides = array<i32>} : memref<1x1x32x32xf32, #tpu.memory_space<vmem>>, vector<1x1x1x32xf32>,
    %c20_i32_100 = arith.constant 20 : i32
    %197 = arith.muli %43, %c20_i32_100 : i32
    %c17_i32 = arith.constant 17 : i32
    %198 = arith.addi %197, %c17_i32 : i32
    %199 = arith.index_cast %198 : i32 to index
    %200 = memref.load %arg2[%199] : memref<160xi32, #tpu.memory_space<smem>>
    %201 = vector.extract_strided_slice %26 {offsets = [17, 0], sizes = [1, 32], strides = [1, 1]} : vector<20x32xf32> to vector<1x32xf32>
    %c0_101 = arith.constant 0 : index
    %c0_102 = arith.constant 0 : index
    %202 = arith.index_cast %200 : i32 to index
    %c0_103 = arith.constant 0 : index
    %203 = vector.load %arg8[%c0_101, %c0_102, %202, %c0_103] : memref<1x1x32x32xf32, #tpu.memory_space<vmem>>, vector<1x1x1x32xf32>
    %204 = vector.shape_cast %203 : vector<1x1x1x32xf32> to vector<1x32xf32>
    %205 = vector.shape_cast %201 : vector<1x32xf32> to vector<1x1x1x32xf32>
    tpu.vector_store %arg8[%c0_101, %c0_102, %202, %c0_103], %205 {strides = array<i32>} : memref<1x1x32x32xf32, #tpu.memory_space<vmem>>, vector<1x1x1x32xf32>,
    %c20_i32_104 = arith.constant 20 : i32
    %206 = arith.muli %43, %c20_i32_104 : i32
    %c18_i32 = arith.constant 18 : i32
    %207 = arith.addi %206, %c18_i32 : i32
    %208 = arith.index_cast %207 : i32 to index
    %209 = memref.load %arg2[%208] : memref<160xi32, #tpu.memory_space<smem>>
    %210 = vector.extract_strided_slice %26 {offsets = [18, 0], sizes = [1, 32], strides = [1, 1]} : vector<20x32xf32> to vector<1x32xf32>
    %c0_105 = arith.constant 0 : index
    %c0_106 = arith.constant 0 : index
    %211 = arith.index_cast %209 : i32 to index
    %c0_107 = arith.constant 0 : index
    %212 = vector.load %arg8[%c0_105, %c0_106, %211, %c0_107] : memref<1x1x32x32xf32, #tpu.memory_space<vmem>>, vector<1x1x1x32xf32>
    %213 = vector.shape_cast %212 : vector<1x1x1x32xf32> to vector<1x32xf32>
    %214 = vector.shape_cast %210 : vector<1x32xf32> to vector<1x1x1x32xf32>
    tpu.vector_store %arg8[%c0_105, %c0_106, %211, %c0_107], %214 {strides = array<i32>} : memref<1x1x32x32xf32, #tpu.memory_space<vmem>>, vector<1x1x1x32xf32>,
    %c20_i32_108 = arith.constant 20 : i32
    %215 = arith.muli %43, %c20_i32_108 : i32
    %c19_i32 = arith.constant 19 : i32
    %216 = arith.addi %215, %c19_i32 : i32
    %217 = arith.index_cast %216 : i32 to index
    %218 = memref.load %arg2[%217] : memref<160xi32, #tpu.memory_space<smem>>
    %219 = vector.extract_strided_slice %26 {offsets = [19, 0], sizes = [1, 32], strides = [1, 1]} : vector<20x32xf32> to vector<1x32xf32>
    %c0_109 = arith.constant 0 : index
    %c0_110 = arith.constant 0 : index
    %220 = arith.index_cast %218 : i32 to index
    %c0_111 = arith.constant 0 : index
    %221 = vector.load %arg8[%c0_109, %c0_110, %220, %c0_111] : memref<1x1x32x32xf32, #tpu.memory_space<vmem>>, vector<1x1x1x32xf32>
    %222 = vector.shape_cast %221 : vector<1x1x1x32xf32> to vector<1x32xf32>
    %223 = vector.shape_cast %219 : vector<1x32xf32> to vector<1x1x1x32xf32>
    tpu.vector_store %arg8[%c0_109, %c0_110, %220, %c0_111], %223 {strides = array<i32>} : memref<1x1x32x32xf32, #tpu.memory_space<vmem>>, vector<1x1x1x32xf32>,
    %224 = arith.truncf %23 : vector<20x32xf32> to vector<20x32xbf16>
    %c0_112 = arith.constant 0 : index
    %c0_113 = arith.constant 0 : index
    %c0_114 = arith.constant 0 : index
    %c0_115 = arith.constant 0 : index
    %225 = vector.load %arg9[%c0_112, %c0_113, %c0_114, %c0_115] : memref<1x1x20x32xbf16, #tpu.memory_space<vmem>>, vector<1x1x20x32xbf16>
    %226 = vector.shape_cast %225 : vector<1x1x20x32xbf16> to vector<20x32xbf16>
    %227 = vector.shape_cast %224 : vector<20x32xbf16> to vector<1x1x20x32xbf16>
    tpu.vector_store %arg9[%c0_112, %c0_113, %c0_114, %c0_115], %227 {strides = array<i32>} : memref<1x1x20x32xbf16, #tpu.memory_space<vmem>>, vector<1x1x20x32xbf16>,
    return
  }
  func.func @transform_0(%arg0: i32, %arg1: i32, %arg2: memref<160xi32, #tpu.memory_space<smem>>) -> (i32, i32, i32, i32) {
    %c0_i32 = arith.constant 0 : i32
    %c0_i32_0 = arith.constant 0 : i32
    %c0_i32_1 = arith.constant 0 : i32
    return %arg0, %arg1, %c0_i32, %c0_i32_0 : i32, i32, i32, i32
  }
  func.func @transform_1(%arg0: i32, %arg1: i32, %arg2: memref<160xi32, #tpu.memory_space<smem>>) -> (i32, i32, i32, i32) {
    %c0_i32 = arith.constant 0 : i32
    %c0_i32_0 = arith.constant 0 : i32
    %c0_i32_1 = arith.constant 0 : i32
    return %arg0, %arg1, %c0_i32, %c0_i32_0 : i32, i32, i32, i32
  }
  func.func @transform_2(%arg0: i32, %arg1: i32, %arg2: memref<160xi32, #tpu.memory_space<smem>>) -> (i32, i32, i32, i32) {
    %c0_i32 = arith.constant 0 : i32
    %c0_i32_0 = arith.constant 0 : i32
    %c0_i32_1 = arith.constant 0 : i32
    return %arg0, %arg1, %c0_i32, %c0_i32_0 : i32, i32, i32, i32
  }
  func.func @transform_3(%arg0: i32, %arg1: i32, %arg2: memref<160xi32, #tpu.memory_space<smem>>) -> (i32, i32, i32, i32) {
    %c0_i32 = arith.constant 0 : i32
    %c0_i32_0 = arith.constant 0 : i32
    %c0_i32_1 = arith.constant 0 : i32
    return %arg0, %arg1, %c0_i32, %c0_i32_0 : i32, i32, i32, i32
  }
  func.func @transform_4(%arg0: i32, %arg1: i32, %arg2: memref<160xi32, #tpu.memory_space<smem>>) -> (i32, i32) {
    %c0_i32 = arith.constant 0 : i32
    %c0_i32_0 = arith.constant 0 : i32
    %c0_i32_1 = arith.constant 0 : i32
    return %c0_i32, %c0_i32_0 : i32, i32
  }
  func.func @transform_5(%arg0: i32, %arg1: i32, %arg2: memref<160xi32, #tpu.memory_space<smem>>) -> (i32, i32, i32, i32) {
    %c0_i32 = arith.constant 0 : i32
    %c0_i32_0 = arith.constant 0 : i32
    %c0_i32_1 = arith.constant 0 : i32
    return %arg0, %arg1, %c0_i32, %c0_i32_0 : i32, i32, i32, i32
  }
  func.func @transform_6(%arg0: i32, %arg1: i32, %arg2: memref<160xi32, #tpu.memory_space<smem>>) -> (i32, i32, i32, i32) {
    %c0_i32 = arith.constant 0 : i32
    %c0_i32_0 = arith.constant 0 : i32
    %c0_i32_1 = arith.constant 0 : i32
    return %arg0, %arg1, %c0_i32, %c0_i32_0 : i32, i32, i32, i32
  }
}

</mosaic_0001>

<bundles_post_ra>
// kernel: tpu_custom_call.1
= control target key start
LH: loop header
LB: loop body
LE: loop exit
PB: predicated region body
PF: predicated region fallthrough
CT: control target
= control target key end

     0   :  { %s1887_s0 = inlined_call_operand.vmem [shape: s32[160], index: 0, kind: input, shape index: {}]   ;;  %s1888_s1 = inlined_call_operand.vmem [shape: s32[2,4,20,1], index: 1, kind: input, shape index: {}]   ;;  %s1889_s2 = inlined_call_operand.vmem [shape: f32[2,4,20,32], index: 2, kind: input, shape index: {}]   ;;  %s1890_s3 = inlined_call_operand.vmem [shape: f32[2,4,32,32], index: 3, kind: input, shape index: {}]   ;;  %s1891_s4 = inlined_call_operand.vmem [shape: f32[2,4,32,32], index: 4, kind: input, shape index: {}]   ;;  %s1892_s5 = inlined_call_operand.vmem [shape: f32[32,32], index: 5, kind: input, shape index: {}]   ;;  %s1893_s6 = inlined_call_operand.hbm [shape: f32[2,4,32,32], index: 6, kind: output, shape index: {0}]   ;;  %s1894_s7 = inlined_call_operand.vmem [shape: bf16[2,4,20,32], index: 7, kind: output, shape index: {1}]  }
   0x1   :  { %1901 = sst [smem:[#allocation15_spill]] %s1888_s1  ;;  %s13_s26 = sshll.u32 %s1887_s0, 4  ;;  %s14_s26 = int_to_ptr.vmem [resolvable:$true] %s13_s26 }
   0x2   :  { %1902 = sst [smem:[#allocation16_spill]] %s1889_s2  ;;  %s1327_s27 = scalar_lea.vmem %s14_s26, 32 }
   0x3   :  { %1903 = sst [smem:[#allocation17_spill]] %s1890_s3  ;;  %p1328_p0 = scmp.ne.s32.totalorder %s14_s26, %s1327_s27 }
   0x4   :  { %1904 = sst [smem:[#allocation18_spill]] %s1891_s4  ;;  %p1332_p1 = scmp.lt.s32.totalorder %s14_s26, %s14_s26 }
   0x5   :  { %1905 = sst [smem:[#allocation19_spill]] %s1892_s5  ;;  %p1333_p2 = scmp.lt.s32.totalorder %s1327_s27, %s1327_s27 }
   0x6   :  { %1906 = sst [smem:[#allocation20_spill]] %s1894_s7 }
   0x7   :  { %p1334_p3 = por %p1333_p2, %p1332_p1 }
   0x9   :  { %p1335_p4 = pnand %p1334_p3, %p1328_p0 }
   0xb   :  { %1338 = shalt.err (!%p1335_p4)  }
   0xc   :  { %s1435_s28 = smov [#allocation3]  }
   0xd   :  { %16 = dma.vmem_to_smem %s14_s26, 32, %s1435_s28, [#allocation2] }
   0xe   :  { %1397 = dma.done.wait [#allocation2], 32 }
   0xf   :  { %1398 = vsyncadd [#allocation2], 4294967264 }
  0x10   :  { %18 = sfence }
  0x11   :  { %19 = vsyncpa [#allocation5], 0 }
  0x12   :  { %21 = vsyncpa [#allocation5 + $0x1], 0  ;;  %s1485_s29 = smov 0   ;;  %s1487_s30 = smov 0  }
  0x13   :  { %s1489_s0 = smov 0   ;;  %s1491_s8 = smov 0  }
  0x14   :  { %s1493_s9 = smov 0   ;;  %s1495_s10 = smov 0  }
  0x15   :  { %s1497_s11 = smov 0   ;;  %s1499_s12 = smov 0  }
  0x16 LB: > { %1907 = sst [smem:[#allocation8_spill]] %s1413_s0  ;;  %s1122_s13 = sadd.s32 4294967295, %s1433_s12   ;;  %s1433_s12 = sphi %s1499_s12, %s27_s12   ;;  %s1429_s11 = sphi %s1497_s11, %s1938_s11   ;;  %s1425_s10 = sphi %s1495_s10, %s1937_s10   ;;  %s1421_s9 = sphi %s1493_s9, %s1936_s9   ;;  %s1417_s8 = sphi %s1491_s8, %s1935_s8   ;;  %s1413_s0 = sphi %s1489_s0, %s1934_s0   ;;  %s1409_s30 = sphi %s1487_s30, %s1940_s30   ;;  %s1405_s29 = sphi %s1485_s29, %s1939_s29  }
  0x17   : > { %1908 = sst [smem:[#allocation9_spill]] %s1425_s10  ;;  %s1123_s14 = sadd.s32 4294967294, %s1433_s12  }
  0x18   : > { %1909 = sst [smem:[#allocation10_spill]] %s1429_s11  ;;  %s36_s15 = sadd.s32 1, %s1425_s10 }
  0x19   : > { %p37_p5 = scmp.ge.s32.totalorder %s36_s15, 4  ;;  %s39_s16 = sadd.s32 1, %s1429_s11 }
  0x1a   : > { %p191_p6 = scmp.ne.s32.totalorder %s1413_s0, %s1409_s30  ;;  %p192_p7 = scmp.eq.s32.totalorder %s1122_s13, 7 }
  0x1b   : > { %s1942_s15 = smov (%p37_p5, %s36_s15), 0  ;;  %s1944_s16 = smov (!%p37_p5, %s39_s16), %s1429_s11 }
  0x1c   : > { %1910 = sst [smem:[#allocation11_spill]] %s1942_s15  ;;  %s177_s17 = ssub.s32 %s1425_s10, %s1942_s15 }
  0x1d   : > { %p1536_p8 = por %p192_p7, %p191_p6  ;;  %p41_p9 = scmp.ge.s32.totalorder %s1944_s16, 2 }
  0x1e   : > { %p197_p10 = scmp.ne.s32.totalorder %s1409_s30, %s1405_s29  ;;  %p198_p11 = scmp.eq.s32.totalorder %s1123_s14, 7 }
  0x1f   : > { %p1126_p12 = scmp.ge.s32.totalorder %s1433_s12, 1  ;;  %s1946_s16 = smov (%p41_p9, %s1944_s16), 0 }
  0x20   : > { %1912 = sst [smem:[#allocation12_spill]] %s1946_s16  ;;  %p1545_p13 = por %p198_p11, %p197_p10 }
  0x21   : > { %p295_p0 = scmp.lt.s32.totalorder %s1433_s12, 9  ;;  %s176_s20 = ssub.s32 %s1429_s11, %s1946_s16 }
  0x22   : > { %s1913_s19 = scalar_select %p1545_p13, 1, 0 }
  0x23   : > { %s181_s21 = sadd.s32 1, %s1413_s0  ;;  %s178_s22 = sor.u32 %s177_s17, %s176_s20 }
  0x24   : > { %1914 = sst [smem:[#allocation13_spill]] %s1913_s19  ;;  %p296_p1 = pnand %p1126_p12, %p295_p0 }
  0x25   : > { %p179_p2 = scmp.eq.s32.totalorder %s178_s22, 0  ;;  %p365_p3 = scmp.lt.s32.totalorder (!%p296_p1), %s1421_s9, 1 }
  0x26   : > { %299 = sbr.rel (%p296_p1) target bundleno = 818 (0x332), region = 40  ;;  %p367_p4 = scmp.lt.s32.totalorder (!%p296_p1), %s1417_s8, 3 }
  0x27   : > { %s1554_s23 = scalar_select %p179_p2, %s1413_s0, %s181_s21  }
  0x28   : > { %s1916_s3 = sld [smem:[#allocation17_spill]] (!%p296_p1) }
  0x29   : > { %1915 = sst [smem:[#allocation14_spill]] %s1554_s23 }
  0x2a   : > { %s1917_s1 = sld [smem:[#allocation15_spill]] (!%p296_p1) }
  0x2b   : > { %v1436_v0 = vmov 0.0   ;;  %vm1437_vm0 = vmmov 0   ;;  %s366_s24 = scalar_select %p365_p3, %s1421_s9, 1  ;;  %v1438_v1 = vmov 0   ;;  %vm420_vm1 = vcmask 261120  }
  0x2c   : > { %1186 = vmatprep.subr.mxu0 %v1436_v0  ;;  %1194 = vmatprep.mubr.msk.f32.mxu0 %vm1437_vm0, %v1436_v0  ;;  %s368_s25 = scalar_select %p367_p4, %s1417_s8, 3  ;;  %v522_v15 = vlaneseq  ;;  %vm548_vm5 = vcmask 257024   ;;  %vm883_vm6 = vcmask 254976   ;;  %vm783_vm7 = vcmask 253952  }
  0x2d   : > { %1313 = vset.pattern.permute.xlu0 %v1438_v1  ;;  %1314 = vset.pattern.permute.xlu1 %v1438_v1  ;;  %s1235_s26 = smul.u32 12, %s366_s24  ;;  %s1131_s27 = sshll.u32 %s366_s24, 4  ;;  %vm788_vm8 = vcmask 254977   ;;  %vm793_vm9 = vcmask 256002   ;;  %vm798_vm10 = vcmask 257027   ;;  %vm803_vm11 = vcmask 258052  }
  0x2e   : > { %1203 = vmatprep.subr.mxu1 %v1436_v0  ;;  %1211 = vmatprep.mubr.msk.f32.mxu1 %vm1437_vm0, %v1436_v0  ;;  %s1234_s28 = smul.u32 3, %s368_s25  ;;  %s1130_s13 = sshll.u32 %s368_s25, 2  ;;  %v523_v16 = vand.u32 127, %v522_v15  ;;  %vm808_vm12 = vcmask 259077   ;;  %vm813_vm13 = vcmask 260102   ;;  %vm818_vm14 = vcmask 261127  }
  0x2f   : > { %s1566_s14 = sadd.s32 %s1131_s27, %s1130_s13  ;;  %s1918_s2 = sld [smem:[#allocation16_spill]] }
  0x30   : > { %s1132_s17 = sshll.u32 %s1566_s14, 3  ;;  %s1569_s20 = sadd.s32 %s1235_s26, %s1234_s28 }
  0x31   : > { %s391_s16 = scalar_lea.vmem %s1916_s3, %s1132_s17  ;;  %s1128_s24 = sshll.u32 %s1569_s20, 3 }
  0x32   : > { %v416_v2 = vld [vmem:[%s391_s16 + $0x18] sm:$0xff]  ;;  %v415_v3 = vld [vmem:[%s391_s16 + $0x10] sm:$0xff]  ;;  %s373_s13 = scalar_lea.vmem %s1917_s1, %s1128_s24  ;;  %v414_v6 = vld [vmem:[%s391_s16 + $0x8] sm:$0xff]  ;;  %s1919_s4 = sld [smem:[#allocation18_spill]] }
  0x33   : > { %1187 = vmatpush3.xpose.msk.msra.mxu0 %vm420_vm1, %v416_v2  ;;  %v524_v4 = vld [vmem:[%s373_s13] sm:$0xff]  ;;  %v526_v5 = vld [vmem:[%s373_s13 + $0x10] sm:$0xf]  ;;  %v525_v7 = vld [vmem:[%s373_s13 + $0x8] sm:$0xff]  ;;  %s1136_s14 = sshll.u32 %s1569_s20, 2  ;;  %s1920_s7 = sld [smem:[#allocation20_spill]] }
  0x34   : > { %1188 = vmatprep.subr.mxu0 %v1436_v0  ;;  %528 = vperm.xlu0 %1313, %v524_v4   ;;  %v413_v9 = vld [vmem:[%s391_s16] sm:$0xff]  ;;  %s1921_s5 = sld [smem:[#allocation19_spill]] }
  0x35   : > { %s382_s21 = scalar_lea.vmem %s1918_s2, %s1128_s24  ;;  %534 = vperm.xlu1 %1314, %v526_v5   ;;  %s1922_s2 = sand.u32 1, %s1409_s30  }
  0x36   : > { %v410_v8 = vld [vmem:[%s382_s21] sm:$0xff]  ;;  %v411_v11 = vld [vmem:[%s382_s21 + $0x8] sm:$0xff]  ;;  %v412_v13 = vld [vmem:[%s382_s21 + $0x10] sm:$0xf] }
  0x37   : > { %1189 = vmatpush3.xpose.msk.msra.mxu0 %vm420_vm1, %v415_v3  ;;  %v417_v10 = vmul.f32 0.17677669, %v410_v8  ;;  %v418_v12 = vmul.f32 0.17677669, %v411_v11  ;;  %v419_v14 = vmul.f32 0.17677669, %v412_v13 }
  0x38   : > { %1190 = vmatprep.subr.mxu0 %v1436_v0  ;;  %531 = vperm.xlu0 %1313, %v525_v7   ;;  %s400_s24 = scalar_lea.vmem %s1919_s4, %s1132_s17 }
  0x39   : > { %v579_v47 = vld [vmem:[%s400_s24 + $0x18] sm:$0xff]  ;;  %v578_v48 = vld [vmem:[%s400_s24 + $0x10] sm:$0xff]  ;;  %v577_v49 = vld [vmem:[%s400_s24 + $0x8] sm:$0xff]  ;;  %s409_s27 = scalar_lea.vmem %s1920_s7, %s1136_s14  ;;  %s1151_s14 = sshll.u32 %s1421_s9, 2 }
  0x3a   : > { %1204 = vmatpush3.msra.mxu1 %v579_v47  ;;  %v576_v50 = vld [vmem:[%s400_s24] sm:$0xff]  ;;  %v671_v1 = vld [vmem:[%s1921_s5 + $0x10] sm:$0xff]  ;;  %v672_v2 = vld [vmem:[%s1921_s5 + $0x18] sm:$0xff]  ;;  %s779_s17 = sadd.s32 %s1417_s8, %s1151_s14 }
  0x3b   : > { %1191 = vmatpush3.xpose.msk.msra.mxu0 %vm420_vm1, %v414_v6  ;;  %1205 = vmatprep.subr.mxu1 %v1436_v0  ;;  %v669_v62 = vld [vmem:[%s1921_s5] sm:$0xff]  ;;  %s1642_s25 = smul.u32 20, %s779_s17 }
  0x3c   : > { %1192 = vmatprep.subr.mxu0 %v1436_v0  ;;  %1206 = vmatpush3.msra.mxu1 %v578_v48 }
  0x3d   : > { %1207 = vmatprep.subr.mxu1 %v1436_v0  ;;  %s790_s13 = sadd.s32 2, %s1642_s25  ;;  %s1650_s26 = sld [smem:[#allocation3 + %s1642_s25]] }
  0x3e   : > { %1208 = vmatpush3.msra.mxu1 %v577_v49  ;;  %s795_s28 = sadd.s32 3, %s1642_s25  ;;  %s800_s16 = sadd.s32 4, %s1642_s25 }
  0x3f   : > { %1193 = vmatpush3.xpose.msk.msra.mxu0 %vm420_vm1, %v413_v9  ;;  %1209 = vmatprep.subr.mxu1 %v1436_v0  ;;  %s1656_s22 = sld [smem:[#allocation3 + %s790_s13]]  ;;  %s805_s24 = sadd.s32 5, %s1642_s25 }
  0x40   : > { %1210 = vmatpush3.msra.mxu1 %v576_v50  ;;  %s1661_s14 = sld [smem:[#allocation3 + %s795_s28]]  ;;  %s810_s17 = sadd.s32 6, %s1642_s25 }
  0x41   : > { %1220 = vmatprep.subr.mxu1 %v579_v47  ;;  %s1664_s20 = sld [smem:[#allocation3 + %s800_s16]]  ;;  %s815_s1 = sadd.s32 7, %s1642_s25 }
  0x42   : > { %1195 = vmatmul.mubr.msk.f32.vlgmr.msra.gmra.mxu0 %vm420_vm1, %v417_v10  ;;  %s1669_s13 = sld [smem:[#allocation3 + %s805_s24]]  ;;  %s820_s4 = sadd.s32 8, %s1642_s25 }
  0x43   : > { %1197 = vmatprep.mubr.msk.f32.mxu0 %vm1437_vm0, %v1436_v0  ;;  %s1671_s3 = sld [smem:[#allocation3 + %s810_s17]]  ;;  %s824_s24 = sadd.s32 9, %s1642_s25 }
  0x44   : > { %s1676_s28 = sld [smem:[#allocation3 + %s815_s1]]  ;;  %s828_s15 = sadd.s32 10, %s1642_s25 }
  0x45   : > { %s1678_s16 = sld [smem:[#allocation3 + %s820_s4]]  ;;  %s832_s11 = sadd.s32 11, %s1642_s25 }
  0x46   : > { %1198 = vmatmul.mubr.msk.f32.gmra.mxu0 %vm420_vm1, %v418_v12  ;;  %s1702_s1 = sld [smem:[#allocation3 + %s824_s24]]  ;;  %s836_s7 = sadd.s32 12, %s1642_s25 }
  0x47   : > { %1200 = vmatprep.mubr.msk.f32.mxu0 %vm1437_vm0, %v1436_v0  ;;  %s840_s24 = sadd.s32 13, %s1642_s25  ;;  %s1717_s4 = sld [smem:[#allocation3 + %s832_s11]] }
  0x48   : > { %s844_s17 = sadd.s32 14, %s1642_s25  ;;  %s1730_s11 = sld [smem:[#allocation3 + %s840_s24]] }
  0x49   : > { %s852_s23 = sadd.s32 16, %s1642_s25  ;;  %s860_s24 = sadd.s32 18, %s1642_s25 }
  0x4a   : > { %1201 = vmatmul.mubr.msk.f32.gmra.mxu0 %vm420_vm1, %v419_v14  ;;  %s864_s0 = sadd.s32 19, %s1642_s25 }
  0xaf   : > { %v529_v17 = vpop.permute.xlu0 %528 }
  0xb0   : > { %vm536_vm2 = vcmp.gt.s32.totalorder %v523_v16, %v529_v17  ;;  %v535_v23 = vpop.permute.xlu1 %534 }
  0xb1   : > { %vm538_vm4 = vcmp.gt.s32.totalorder %v523_v16, %v535_v23 }
  0xb3   : > { %v532_v19 = vpop.permute.xlu0 %531 }
  0xb4   : > { %vm537_vm3 = vcmp.gt.s32.totalorder %v523_v16, %v532_v19 }
 0x102   : > { %v508_v18 = vpop.f32.mrf.mxu0 }
 0x103   : > { %v539_v20 = vsel %vm536_vm2, -1e+30, %v508_v18 }
 0x104   : > { %v1196_v21 = vpop.f32.mrf.mxu0  ;;  %v542_v22 = vsel %vm420_vm1, %v539_v20, -inf }
 0x105   : > { %543 = vmax.xlane.f32.xlu1 %v542_v22 }
 0x106   : > { %v513_v24 = vpop.f32.mrf.mxu0 }
 0x107   : > { %v540_v25 = vsel %vm537_vm3, -1e+30, %v513_v24 }
 0x108   : > { %v1199_v26 = vpop.f32.mrf.mxu0  ;;  %v545_v27 = vsel %vm420_vm1, %v540_v25, -inf }
 0x109   : > { %546 = vmax.xlane.f32.xlu0 %v545_v27 }
 0x10a   : > { %v518_v28 = vpop.f32.mrf.mxu0 }
 0x10b   : > { %v541_v29 = vsel %vm538_vm4, -1e+30, %v518_v28 }
 0x10c   : > { %v1202_v30 = vpop.f32.mrf.mxu0  ;;  %v549_v31 = vsel %vm548_vm5, %v541_v29, -inf }
 0x10d   : > { %550 = vmax.xlane.f32.xlu0 %v549_v31 }
 0x18e   : > { %v544_v32 = vpop.xlane.xlu1 %543 }
 0x18f   : > { %v552_v33 = vsub.f32 %v539_v20, %v544_v32 }
 0x191   : > { %v555_v34 = vmul.f32 1.442695, %v552_v33 }
 0x192   : > { %v547_v35 = vpop.xlane.xlu0 %546 }
 0x193   : > { %1315 = vpow2.f32 %v555_v34  ;;  %v553_v36 = vsub.f32 %v540_v25, %v547_v35 }
 0x195   : > { %v557_v37 = vmul.f32 1.442695, %v553_v36 }
 0x196   : > { %v551_v38 = vpop.xlane.xlu0 %550 }
 0x197   : > { %1317 = vpow2.f32 %v557_v37  ;;  %v554_v39 = vsub.f32 %v541_v29, %v551_v38 }
 0x199   : > { %v559_v40 = vmul.f32 1.442695, %v554_v39 }
 0x19b   : > { %1319 = vpow2.f32 %v559_v40 }
 0x1a0   : > { %v1316_v41 = vpop.eup %1315 }
 0x1a1   : > { %v561_v42 = vsel %vm420_vm1, %v1316_v41, 0.0 }
 0x1a2   : > { %562 = vadd.xlane.f32.xlu1 %v561_v42 }
 0x1a4   : > { %v1318_v43 = vpop.eup %1317 }
 0x1a5   : > { %v564_v44 = vsel %vm420_vm1, %v1318_v43, 0.0 }
 0x1a6   : > { %565 = vadd.xlane.f32.xlu0 %v564_v44 }
 0x1a8   : > { %v1320_v45 = vpop.eup %1319 }
 0x1a9   : > { %v567_v46 = vsel %vm548_vm5, %v1320_v45, 0.0 }
 0x1aa   : > { %568 = vadd.xlane.f32.xlu1 %v567_v46 }
 0x22b   : > { %v563_v51 = vpop.xlane.xlu1 %562 }
 0x22c   : > { %1321 = vrcp.f32 %v563_v51 }
 0x22f   : > { %v566_v52 = vpop.xlane.xlu0 %565 }
 0x230   : > { %1323 = vrcp.f32 %v566_v52 }
 0x233   : > { %v569_v53 = vpop.xlane.xlu1 %568 }
 0x234   : > { %1325 = vrcp.f32 %v569_v53 }
 0x239   : > { %v1322_v54 = vpop.eup %1321 }
 0x23a   : > { %v573_v55 = vmul.f32 %v1322_v54, %v1316_v41 }
 0x23c   : > { %1212 = vmatmul.mubr.msk.f32.vlgmr.msra.gmra.mxu1 %vm420_vm1, %v573_v55  ;;  %v1161_v56 = vpack.c.bf16 %v573_v55, %v573_v55 }
 0x23d   : > { %v1324_v57 = vpop.eup %1323  ;;  %1221 = vmatpush3.msra.mxu1 %v579_v47  ;;  %1214 = vmatprep.mubr.msk.f32.mxu1 %vm1437_vm0, %v1436_v0 }
 0x23e   : > { %881 = vst.msk [vmem:[%s409_s27] sm:$0xf] %vm548_vm5, %v1161_v56  ;;  %1222 = vmatprep.subr.mxu1 %v578_v48  ;;  %v574_v58 = vmul.f32 %v1324_v57, %v1318_v43 }
 0x23f   : > { %1223 = vmatpush3.msra.mxu1 %v578_v48 }
 0x240   : > { %1215 = vmatmul.mubr.msk.f32.gmra.mxu1 %vm420_vm1, %v574_v58  ;;  %v1162_v59 = vpack.c.bf16 %v574_v58, %v574_v58  ;;  %1224 = vmatprep.subr.mxu1 %v577_v49 }
 0x241   : > { %v1326_v60 = vpop.eup %1325  ;;  %1225 = vmatpush3.msra.mxu1 %v577_v49  ;;  %1217 = vmatprep.mubr.msk.f32.mxu1 %vm1437_vm0, %v1436_v0  ;;  %v670_v0 = vld [vmem:[%s1921_s5 + $0x8] sm:$0xff] }
 0x242   : > { %882 = vst.msk [vmem:[%s409_s27 + $0x4] sm:$0xf] %vm548_vm5, %v1162_v59  ;;  %v575_v61 = vmul.f32 %v1326_v60, %v1320_v45  ;;  %1226 = vmatprep.subr.mxu1 %v576_v50 }
 0x243   : > { %1227 = vmatpush3.msra.mxu1 %v576_v50 }
 0x244   : > { %1218 = vmatmul.mubr.msk.f32.gmra.mxu1 %vm420_vm1, %v575_v61  ;;  %v1163_v63 = vpack.c.bf16 %v575_v61, %v575_v61 }
 0x245   : > { %1228 = vmatprep.mubr.msk.f32.mxu1 %vm420_vm1, %v669_v62 }
 0x246   : > { %884 = vst.msk [vmem:[%s409_s27 + $0x8] sm:$0x3] %vm883_vm6, %v1163_v63  ;;  %s785_s27 = sadd.s32 1, %s1642_s25 }
 0x247   : > { %s1653_s21 = sld [smem:[#allocation3 + %s785_s27]]  ;;  %s1127_s27 = sshll.u32 %s1922_s2, 5 }
 0x248   : > { %1229 = vmatmul.mubr.msk.f32.vlgmr.msra.gmra.mxu1 %vm420_vm1, %v670_v0  ;;  %s1680_s5 = scalar_lea.vmem [#allocation4], %s1127_s27  ;;  %s1709_s27 = sld [smem:[#allocation3 + %s828_s15]] }
 0x249   : > { %1231 = vmatprep.mubr.msk.f32.mxu1 %vm420_vm1, %v671_v1  ;;  %s782_s2 = scalar_lea.vmem %s1680_s5, %s1650_s26 [#allocation4]  ;;  %s1722_s15 = sld [smem:[#allocation3 + %s836_s7]] }
 0x24a   : > { %s848_s26 = sadd.s32 15, %s1642_s25  ;;  %s1738_s7 = sld [smem:[#allocation3 + %s844_s17]] }
 0x24b   : > { %s1926_s17 = scalar_lea.vmem %s1680_s5, %s1664_s20 [#allocation4]  ;;  %s1928_s19 = scalar_lea.vmem %s1680_s5, %s1671_s3 [#allocation4] }
 0x24c   : > { %1232 = vmatmul.mubr.msk.f32.gmra.mxu1 %vm420_vm1, %v672_v2  ;;  %s1930_s3 = scalar_lea.vmem %s1680_s5, %s1678_s16 [#allocation4] }
 0x24d   : > { %s1923_s10 = scalar_lea.vmem %s1680_s5, %s1653_s21 [#allocation4]  ;;  %s1925_s21 = scalar_lea.vmem %s1680_s5, %s1661_s14 [#allocation4] }
 0x24e   : > { %s1756_s14 = sld [smem:[#allocation3 + %s852_s23]]  ;;  %s830_s20 = scalar_lea.vmem %s1680_s5, %s1709_s27 [#allocation4] }
 0x24f   : > { %s1773_s23 = sld [smem:[#allocation3 + %s860_s24]] }
 0x250   : > { %s846_s16 = scalar_lea.vmem %s1680_s5, %s1738_s7 [#allocation4] }
 0x254   : > { %s854_s27 = scalar_lea.vmem %s1680_s5, %s1756_s14 [#allocation4]  ;;  %s1931_s14 = sand.u32 1, %s1409_s30  }
 0x255   : > { %s862_s7 = scalar_lea.vmem %s1680_s5, %s1773_s23 [#allocation4] }
 0x2fc   : > { %v1645_v3 = vpop.f32.mrf.mxu1 }
 0x2fe   : > { %v1213_v4 = vpop.f32.mrf.mxu1 }
 0x300   : > { %v1659_v5 = vpop.f32.mrf.mxu1 }
 0x302   : > { %v1216_v6 = vpop.f32.mrf.mxu1 }
 0x304   : > { %v1674_v7 = vpop.f32.mrf.mxu1 }
 0x306   : > { %v1219_v8 = vpop.f32.mrf.mxu1 }
 0x308   : > { %v1230_v9 = vpop.f32.mrf.mxu1 }
 0x309   : > { %775 = vst.msk [vmem:[%s1680_s5 + $0x8] sm:$0xff] %vm420_vm1, %v1230_v9 }
 0x30a   : > { %v755_v10 = vpop.f32.mrf.mxu1 }
 0x30b   : > { %774 = vst.msk [vmem:[%s1680_s5] sm:$0xff] %vm420_vm1, %v755_v10 }
 0x30c   : > { %v1233_v11 = vpop.f32.mrf.mxu1 }
 0x30d   : > { %777 = vst.msk [vmem:[%s1680_s5 + $0x18] sm:$0xff] %vm420_vm1, %v1233_v11 }
 0x30e   : > { %v765_v12 = vpop.f32.mrf.mxu1 }
 0x30f   : > { %776 = vst.msk [vmem:[%s1680_s5 + $0x10] sm:$0xff] %vm420_vm1, %v765_v12 }
 0x310   : > { %784 = vst.msk [vmem:[%s782_s2] sm:$0x1] %vm783_vm7, %v1645_v3  ;;  %s1924_s2 = scalar_lea.vmem %s1680_s5, %s1656_s22 [#allocation4]  ;;  %s1746_s22 = sld [smem:[#allocation3 + %s848_s26]] }
 0x311   : > { %789 = vst.msk [vmem:[%s1923_s10 - $0x1] sm:$0x2] %vm788_vm8, %v1645_v3  ;;  %s856_s10 = sadd.s32 17, %s1642_s25  ;;  %s1157_s25 = sshll.u32 %s1421_s9, 4 }
 0x312   : > { %794 = vst.msk [vmem:[%s1924_s2 - $0x2] sm:$0x4] %vm793_vm9, %v1645_v3  ;;  %s826_s2 = scalar_lea.vmem %s1680_s5, %s1702_s1 [#allocation4]  ;;  %s1763_s26 = sld [smem:[#allocation3 + %s856_s10]] }
 0x313   : > { %799 = vst.msk [vmem:[%s1925_s21 - $0x3] sm:$0x8] %vm798_vm10, %v1645_v3  ;;  %s1927_s21 = scalar_lea.vmem %s1680_s5, %s1669_s13 [#allocation4]  ;;  %s1929_s13 = scalar_lea.vmem %s1680_s5, %s1676_s28 [#allocation4] }
 0x314   : > { %804 = vst.msk [vmem:[%s1926_s17 - $0x4] sm:$0x10] %vm803_vm11, %v1645_v3  ;;  %s1156_s1 = sshll.u32 %s1417_s8, 2  ;;  %s834_s10 = scalar_lea.vmem %s1680_s5, %s1717_s4 [#allocation4] }
 0x315   : > { %809 = vst.msk [vmem:[%s1927_s21 - $0x5] sm:$0x20] %vm808_vm12, %v1645_v3  ;;  %s838_s28 = scalar_lea.vmem %s1680_s5, %s1722_s15 [#allocation4]  ;;  %s842_s8 = scalar_lea.vmem %s1680_s5, %s1730_s11 [#allocation4] }
 0x316   : > { %814 = vst.msk [vmem:[%s1928_s19 - $0x6] sm:$0x40] %vm813_vm13, %v1645_v3  ;;  %s865_s19 = sld [smem:[#allocation3 + %s864_s0]]  ;;  %s907_s9 = sadd.s32 %s1157_s25, %s1156_s1 }
 0x317   : > { %819 = vst.msk [vmem:[%s1929_s13 - $0x7] sm:$0x80] %vm818_vm14, %v1645_v3  ;;  %s850_s0 = scalar_lea.vmem %s1680_s5, %s1746_s22 [#allocation4]  ;;  %s910_s4 = sshll.u32 %s1680_s5, 4  ;;  %s1818_s4 = int_to_ptr.vmem [resolvable:$true] %s910_s4 }
 0x318   : > { %823 = vst.msk [vmem:[%s1930_s3] sm:$0x1] %vm783_vm7, %v1659_v5  ;;  %s1158_s15 = sshll.u32 %s907_s9, 7  ;;  %s858_s11 = scalar_lea.vmem %s1680_s5, %s1763_s26 [#allocation4] }
 0x319   : > { %827 = vst.msk [vmem:[%s826_s2 - $0x1] sm:$0x2] %vm788_vm8, %v1659_v5  ;;  %s1826_s2 = scalar_lea.hbm %s1893_s6, %s1158_s15  ;;  %s1836_s21 = scalar_lea.sflag [#allocation5], %s1931_s14 }
 0x31a   : > { %831 = vst.msk [vmem:[%s830_s20 - $0x2] sm:$0x4] %vm793_vm9, %v1659_v5  ;;  %s1339_s26 = scalar_lea.vmem %s1818_s4, 512 }
 0x31b   : > { %835 = vst.msk [vmem:[%s834_s10 - $0x3] sm:$0x8] %vm798_vm10, %v1659_v5  ;;  %p1340_p5 = scmp.ne.s32.totalorder %s1818_s4, %s1339_s26 }
 0x31c   : > { %839 = vst.msk [vmem:[%s838_s28 - $0x4] sm:$0x10] %vm803_vm11, %v1659_v5  ;;  %s866_s22 = scalar_lea.vmem %s1680_s5, %s865_s19 [#allocation4]  ;;  %s1439_s5 = smov [#allocation4]  }
 0x31d   : > { %843 = vst.msk [vmem:[%s842_s8 - $0x5] sm:$0x20] %vm808_vm12, %v1659_v5  ;;  %p1341_p6 = pnand %p1340_p5, %p1536_p8  ;;  %s1343_s20 = sshll.u32 %s1439_s5, 4  ;;  %s1344_s20 = int_to_ptr.vmem [resolvable:$false] %s1343_s20 }
 0x31e   : > { %847 = vst.msk [vmem:[%s846_s16 - $0x6] sm:$0x40] %vm813_vm13, %v1659_v5  ;;  %s1345_s23 = scalar_lea.vmem %s1344_s20, 1024  ;;  %p1346_p9 = scmp.lt.s32.totalorder %s1818_s4, %s1344_s20 }
 0x31f   : > { %851 = vst.msk [vmem:[%s850_s0 - $0x7] sm:$0x80] %vm818_vm14, %v1659_v5  ;;  %p1342_p7 = pneg %p1341_p6  ;;  %p1347_p10 = scmp.lt.s32.totalorder %s1345_s23, %s1339_s26 }
 0x320   : > { %855 = vst.msk [vmem:[%s854_s27] sm:$0x1] %vm783_vm7, %v1674_v7 }
 0x321   : > { %859 = vst.msk [vmem:[%s858_s11 - $0x1] sm:$0x2] %vm788_vm8, %v1674_v7  ;;  %p1348_p11 = por %p1347_p10, %p1346_p9 }
 0x322   : > { %863 = vst.msk [vmem:[%s862_s7 - $0x2] sm:$0x4] %vm793_vm9, %v1674_v7 }
 0x323   : > { %867 = vst.msk [vmem:[%s866_s22 - $0x3] sm:$0x8] %vm798_vm10, %v1674_v7  ;;  %p1349_p12 = pnand %p1348_p11, %p1342_p7 }
 0x325   : > { %1352 = shalt.err (!%p1349_p12)
}
 0x326   : > { %s1353_s13 = scalar_lea.hbm %s1826_s2, 512  ;;  %s1357_s3 = scalar_lea.hbm %s1893_s6, 4096 }
 0x327   : > { %p1354_p0 = scmp.ne.s32.totalorder %s1826_s2, %s1353_s13  ;;  %p1358_p3 = scmp.lt.s32.totalorder %s1826_s2, %s1893_s6 }
 0x328   : > { %p1359_p4 = scmp.lt.s32.totalorder %s1357_s3, %s1353_s13 }
 0x329   : > { %p1355_p1 = pnand %p1354_p0, %p1536_p8 }
 0x32a   : > { %p1360_p5 = por %p1359_p4, %p1358_p3 }
 0x32b   : > { %p1356_p2 = pneg %p1355_p1 }
 0x32d   : > { %p1361_p6 = pnand %p1360_p5, %p1356_p2 }
 0x32f   : > { %1364 = shalt.err (!%p1361_p6)
}
 0x330   : > { %s1440_s28 = smov 128   ;;  %s1441_s8 = smov 8  }
 0x331   : > { %1236 = dma.vmem_to_hbm [thread:$0]  (%p1536_p8), %s1818_s4, 512, %s1826_s2, %s1836_s21, %s1440_s28, %s1440_s28, %s1441_s8  }
 0x332 PF: > { %p1242_p7 = scmp.ge.s32.totalorder %s1433_s12, 2  ;;  %s928_s16 = sand.u32 1, %s1405_s29  }
 0x333   : > { %s929_s0 = scalar_lea.sflag [#allocation5], %s928_s16 }
 0x334   : > { %p1239_p9 = pnand %p1242_p7, %p1545_p13 }
 0x336   : > { %p1240_p10 = pneg %p1239_p9 }
 0x338   : > { %1400 = dma.done.wait (%p1240_p10), %s929_s0, 512  }
 0x339   : > { %1402 = vsyncadd (%p1240_p10), %s929_s0, 4294966784  ;;  %s27_s12 = sadd.s32 1, %s1433_s12   ;;  %s1933_s27 = sld [smem:[#allocation8_spill]] }
 0x33a   : > { %p24_p11 = scmp.ge.s32.totalorder %s27_s12, 10   ;;  %s1934_s0 = sld [smem:[#allocation14_spill]] }
 0x33b   : > { %s1935_s8 = sld [smem:[#allocation9_spill]]  ;;  %s1939_s29 = smov %s1409_s30 }
 0x33c   : > { %s1936_s9 = sld [smem:[#allocation10_spill]]  ;;  %26 = sbr.rel (!%p24_p11) target bundleno = 22 (0x16), region = 116 }
 0x33d   : > { %s1937_s10 = sld [smem:[#allocation11_spill]] }
 0x33e   : > { %s1938_s11 = sld [smem:[#allocation12_spill]] }
 0x33f   : > { %s1940_s30 = smov %s1933_s27 }
 0x341   :  { %946 = vsyncpa [#allocation5], 1 }
 0x342   :  { %948 = vsyncpa [#allocation5 + $0x1], 1 }

</bundles_post_ra>
